<compile_context>
chip_gen: v7x
topology: tpu7x:2x2x1
jax: 0.10.0
libtpu: 0.0.40
codegen_flags: <defaults>
</compile_context>

<pallas_src>
import functools

import jax
import jax.numpy as jnp
from jax.experimental import pallas as pl
from jax.experimental.pallas import tpu as pltpu


def _fused_conv_bn_relu_kernel(x_ref, w_ref, gb_ref, mask_ref, o_ref, *,
                               n_img, cout, kh, kw, wp, eps, count):
    """Fused implicit-GEMM conv + training-mode BatchNorm + ReLU.

    x_ref    : (N, Cin, Hp*Wp + KW-1)  bf16  row-flattened, spatially padded input
    w_ref    : (KH*KW, Cout, Cin)      bf16  per-tap conv weights
    gb_ref   : (Cout, 2)               f32   [:,0]=gamma, [:,1]=beta
    mask_ref : (1, Ho*Wp)              f32   1.0 on valid output columns, else 0.0
    o_ref    : (N, Cout, Ho*Wp)        f32   normalised+ReLU output (NCHW-compatible)
    """
    L = o_ref.shape[-1]                       # Ho * Wp
    inv_count = 1.0 / count

    # Hoisted once (JAX does not CSE broadcasts inside loops).
    maskv = jnp.broadcast_to(mask_ref[...], (cout, L))

    # ---- pass 1: conv as KH*KW accumulated bf16 MXU matmuls + per-ch sums ----
    conv = []                                  # per-image (Cout, L) f32 values
    tot = jnp.zeros((cout, 1), jnp.float32)
    for n in range(n_img):
        acc = jnp.zeros((cout, L), jnp.float32)
        for i in range(kh):
            for j in range(kw):
                s = i * wp + j                 # static flat offset of tap (i, j)
                xv = x_ref[n, :, s:s + L]      # (Cin, L) shifted view, bf16
                wt = w_ref[i * kw + j]         # (Cout, Cin) tap weights, bf16
                acc = acc + jnp.dot(wt, xv, preferred_element_type=jnp.float32)
        conv.append(acc)
        # Conv bias omitted: exactly cancelled by the BN mean subtraction below.
        tot = tot + jnp.sum(acc * maskv, axis=1, keepdims=True)

    mean = tot * inv_count                     # (Cout, 1)

    # ---- pass 2: center (rebinding, no extra live copy) + sum of sq. dev. ----
    ssq = jnp.zeros((cout, 1), jnp.float32)
    for n in range(n_img):
        c = conv[n] - mean
        conv[n] = c                            # old un-centered value is now dead
        ssq = ssq + jnp.sum((c * c) * maskv, axis=1, keepdims=True)
    var = ssq * inv_count                      # biased batch variance

    scale = gb_ref[:, 0:1] * jax.lax.rsqrt(var + eps)   # gamma * rsqrt(var+eps)
    shift = gb_ref[:, 1:2]                               # beta

    # ---- pass 3: normalise + affine + ReLU, store per image ------------------
    for n in range(n_img):
        o_ref[n] = jnp.maximum(conv[n] * scale + shift, 0.0).astype(o_ref.dtype)


def conv_bn_relu(x_nchw, w_oihw, bias, gamma, beta, *, padding, eps=1e-5):
    """NCHW in / NCHW out.  `bias` accepted for API fidelity but not needed:
    the Conv2d bias is exactly cancelled by training-mode BatchNorm."""
    del bias  # mathematically cancelled by the BN mean subtraction
    N, Cin, H, W = x_nchw.shape
    Cout, _, KH, KW = w_oihw.shape
    Hp, Wp = H + 2 * padding, W + 2 * padding
    Ho, Wo = Hp - KH + 1, Wp - KW + 1          # stride fixed at 1 (module spec)
    L = Ho * Wp                                 # flat rows incl. KW-1 garbage cols/row

    # ---- cheap wrapper prep: pad + free reshape (no transposes, no im2col) ---
    xp = jnp.pad(x_nchw, ((0, 0), (0, 0), (padding, padding), (padding, padding)))
    x_flat = xp.reshape(N, Cin, Hp * Wp)                      # free reshape
    x_flat = jnp.pad(x_flat, ((0, 0), (0, 0), (0, KW - 1)))   # tail slack for last tap
    x_flat = x_flat.astype(jnp.bfloat16)                      # bf16 MXU operands

    w_taps = jnp.transpose(w_oihw, (2, 3, 0, 1)).reshape(KH * KW, Cout, Cin)
    w_taps = w_taps.astype(jnp.bfloat16)

    gb = jnp.stack([gamma, beta], axis=1).astype(jnp.float32)  # (Cout, 2)

    col = jnp.arange(L, dtype=jnp.int32) % Wp
    mask = (col < Wo).astype(jnp.float32).reshape(1, L)        # valid-column mask

    kernel = functools.partial(
        _fused_conv_bn_relu_kernel,
        n_img=N, cout=Cout, kh=KH, kw=KW, wp=Wp,
        eps=eps, count=float(N * Ho * Wo))

    vspec = pl.BlockSpec(memory_space=pltpu.MemorySpace.VMEM)
    out_flat = pl.pallas_call(
        kernel,
        out_shape=jax.ShapeDtypeStruct((N, Cout, L), jnp.float32),
        in_specs=[vspec, vspec, vspec, vspec],
        out_specs=vspec,
    )(x_flat, w_taps, gb, mask)

    # (N, Cout, Ho*Wp) -> (N, Cout, Ho, Wp) -> drop the KW-1 garbage columns.
    return out_flat.reshape(N, Cout, Ho, Wp)[:, :, :, :Wo]


def _reference(x, w, b, gamma, beta, padding, eps=1e-5, operand_dtype=jnp.float32):
    """Pure-JAX reference matching Conv2d + BatchNorm2d(train) + ReLU."""
    y = jax.lax.conv_general_dilated(
        x.astype(operand_dtype), w.astype(operand_dtype), window_strides=(1, 1),
        padding=[(padding, padding), (padding, padding)],
        dimension_numbers=("NCHW", "OIHW", "NCHW"),
        preferred_element_type=jnp.float32)
    y = y + b[None, :, None, None]
    mean = jnp.mean(y, axis=(0, 2, 3))
    var = jnp.var(y, axis=(0, 2, 3))  # biased, as PyTorch BN uses for normalization
    yn = (y - mean[None, :, None, None]) * jax.lax.rsqrt(var + eps)[None, :, None, None]
    yn = yn * gamma[None, :, None, None] + beta[None, :, None, None]
    return jnp.maximum(yn, 0.0)


if __name__ == "__main__":
    # Small shapes consistent with the module:
    #   conv(in_ch=4, out_ch=8, kernel_size=3, stride=1, padding=1)
    N, Cin, H, W = 2, 4, 16, 16
    Cout, Kk, PAD = 8, 3, 1

    key = jax.random.PRNGKey(0)
    kx, kw, kb = jax.random.split(key, 3)

    x = jax.random.normal(kx, (N, Cin, H, W), dtype=jnp.float32)

    # Deterministic Conv2d-style init: U(-bound, bound), bound = 1/sqrt(fan_in)
    fan_in = Cin * Kk * Kk
    bound = 1.0 / (fan_in ** 0.5)
    w = jax.random.uniform(kw, (Cout, Cin, Kk, Kk), jnp.float32, -bound, bound)
    b = jax.random.uniform(kb, (Cout,), jnp.float32, -bound, bound)
    gamma = jnp.ones((Cout,), jnp.float32)   # BatchNorm2d default weight
    beta = jnp.zeros((Cout,), jnp.float32)   # BatchNorm2d default bias

    out = conv_bn_relu(x, w, b, gamma, beta, padding=PAD)
    out = jax.block_until_ready(out)
    assert out.shape == (N, Cout, H, W), out.shape

    # Tight check of the kernel logic against a reference whose matmul operands
    # are rounded to bf16 the same way (f32 accumulation in both).
    ref_bf16 = _reference(x, w, b, gamma, beta, PAD, operand_dtype=jnp.bfloat16)
    err_logic = float(jnp.max(jnp.abs(out - ref_bf16)))
    assert err_logic < 2e-3, err_logic

    # Looser end-to-end check against the full-f32 reference: the residual is
    # pure bf16 operand-rounding noise (BN normalisation keeps it O(1e-2) abs).
    ref_f32 = _reference(x, w, b, gamma, beta, PAD)
    err_full = float(jnp.max(jnp.abs(out - ref_f32)))
    assert err_full < 2e-2, err_full

    print("KERNEL_OK")
</pallas_src>

<mosaic_0001>
module attributes {stable_mosaic.version = 11 : i64} {
  func.func @_fused_conv_bn_relu_kernel(%arg0: memref<2x4x326xbf16, #tpu.memory_space<vmem>>, %arg1: memref<9x8x4xbf16, #tpu.memory_space<vmem>>, %arg2: memref<8x2xf32, #tpu.memory_space<vmem>>, %arg3: memref<1x288xf32, #tpu.memory_space<vmem>>, %arg4: memref<2x8x288xf32, #tpu.memory_space<vmem>>) attributes {dimension_semantics = [], scalar_prefetch = 0 : i64, scratch_operands = 0 : i64, tpu.core_type = #tpu.core_type<tc>} {
    %c0 = arith.constant 0 : index
    %c0_0 = arith.constant 0 : index
    %0 = vector.load %arg3[%c0, %c0_0] : memref<1x288xf32, #tpu.memory_space<vmem>>, vector<1x288xf32>
    %1 = vector.shape_cast %0 : vector<1x288xf32> to vector<1x288xf32>
    %2 = vector.broadcast %1 : vector<1x288xf32> to vector<8x288xf32>
    %cst = arith.constant 0.000000e+00 : f32
    %3 = vector.broadcast %cst : f32 to vector<8x1xf32>
    %cst_1 = arith.constant 0.000000e+00 : f32
    %4 = vector.broadcast %cst_1 : f32 to vector<8x288xf32>
    %c0_2 = arith.constant 0 : index
    %c0_3 = arith.constant 0 : index
    %c0_4 = arith.constant 0 : index
    %5 = vector.load %arg0[%c0_2, %c0_3, %c0_4] : memref<2x4x326xbf16, #tpu.memory_space<vmem>>, vector<1x4x288xbf16>
    %6 = vector.shape_cast %5 : vector<1x4x288xbf16> to vector<4x288xbf16>
    %c0_5 = arith.constant 0 : index
    %c0_6 = arith.constant 0 : index
    %c0_7 = arith.constant 0 : index
    %7 = vector.load %arg1[%c0_5, %c0_6, %c0_7] : memref<9x8x4xbf16, #tpu.memory_space<vmem>>, vector<1x8x4xbf16>
    %8 = vector.shape_cast %7 : vector<1x8x4xbf16> to vector<8x4xbf16>
    %cst_8 = arith.constant dense<0.000000e+00> : vector<8x288xf32>
    %9 = tpu.matmul %8, %6, %cst_8 {dimension_numbers = #tpu.dot_dimension_numbers<[1], [0], [0], [1], [0, 0, 1, 1], [], []>} : vector<8x4xbf16>, vector<4x288xbf16>, vector<8x288xf32> -> vector<8x288xf32>
    %10 = arith.addf %4, %9 : vector<8x288xf32>
    %c0_9 = arith.constant 0 : index
    %c0_10 = arith.constant 0 : index
    %c1 = arith.constant 1 : index
    %11 = vector.load %arg0[%c0_9, %c0_10, %c1] : memref<2x4x326xbf16, #tpu.memory_space<vmem>>, vector<1x4x288xbf16>
    %12 = vector.shape_cast %11 : vector<1x4x288xbf16> to vector<4x288xbf16>
    %c1_11 = arith.constant 1 : index
    %c0_12 = arith.constant 0 : index
    %c0_13 = arith.constant 0 : index
    %13 = vector.load %arg1[%c1_11, %c0_12, %c0_13] : memref<9x8x4xbf16, #tpu.memory_space<vmem>>, vector<1x8x4xbf16>
    %14 = vector.shape_cast %13 : vector<1x8x4xbf16> to vector<8x4xbf16>
    %cst_14 = arith.constant dense<0.000000e+00> : vector<8x288xf32>
    %15 = tpu.matmul %14, %12, %cst_14 {dimension_numbers = #tpu.dot_dimension_numbers<[1], [0], [0], [1], [0, 0, 1, 1], [], []>} : vector<8x4xbf16>, vector<4x288xbf16>, vector<8x288xf32> -> vector<8x288xf32>
    %16 = arith.addf %10, %15 : vector<8x288xf32>
    %c0_15 = arith.constant 0 : index
    %c0_16 = arith.constant 0 : index
    %c2 = arith.constant 2 : index
    %17 = vector.load %arg0[%c0_15, %c0_16, %c2] : memref<2x4x326xbf16, #tpu.memory_space<vmem>>, vector<1x4x288xbf16>
    %18 = vector.shape_cast %17 : vector<1x4x288xbf16> to vector<4x288xbf16>
    %c2_17 = arith.constant 2 : index
    %c0_18 = arith.constant 0 : index
    %c0_19 = arith.constant 0 : index
    %19 = vector.load %arg1[%c2_17, %c0_18, %c0_19] : memref<9x8x4xbf16, #tpu.memory_space<vmem>>, vector<1x8x4xbf16>
    %20 = vector.shape_cast %19 : vector<1x8x4xbf16> to vector<8x4xbf16>
    %cst_20 = arith.constant dense<0.000000e+00> : vector<8x288xf32>
    %21 = tpu.matmul %20, %18, %cst_20 {dimension_numbers = #tpu.dot_dimension_numbers<[1], [0], [0], [1], [0, 0, 1, 1], [], []>} : vector<8x4xbf16>, vector<4x288xbf16>, vector<8x288xf32> -> vector<8x288xf32>
    %22 = arith.addf %16, %21 : vector<8x288xf32>
    %c0_21 = arith.constant 0 : index
    %c0_22 = arith.constant 0 : index
    %c18 = arith.constant 18 : index
    %23 = vector.load %arg0[%c0_21, %c0_22, %c18] : memref<2x4x326xbf16, #tpu.memory_space<vmem>>, vector<1x4x288xbf16>
    %24 = vector.shape_cast %23 : vector<1x4x288xbf16> to vector<4x288xbf16>
    %c3 = arith.constant 3 : index
    %c0_23 = arith.constant 0 : index
    %c0_24 = arith.constant 0 : index
    %25 = vector.load %arg1[%c3, %c0_23, %c0_24] : memref<9x8x4xbf16, #tpu.memory_space<vmem>>, vector<1x8x4xbf16>
    %26 = vector.shape_cast %25 : vector<1x8x4xbf16> to vector<8x4xbf16>
    %cst_25 = arith.constant dense<0.000000e+00> : vector<8x288xf32>
    %27 = tpu.matmul %26, %24, %cst_25 {dimension_numbers = #tpu.dot_dimension_numbers<[1], [0], [0], [1], [0, 0, 1, 1], [], []>} : vector<8x4xbf16>, vector<4x288xbf16>, vector<8x288xf32> -> vector<8x288xf32>
    %28 = arith.addf %22, %27 : vector<8x288xf32>
    %c0_26 = arith.constant 0 : index
    %c0_27 = arith.constant 0 : index
    %c19 = arith.constant 19 : index
    %29 = vector.load %arg0[%c0_26, %c0_27, %c19] : memref<2x4x326xbf16, #tpu.memory_space<vmem>>, vector<1x4x288xbf16>
    %30 = vector.shape_cast %29 : vector<1x4x288xbf16> to vector<4x288xbf16>
    %c4 = arith.constant 4 : index
    %c0_28 = arith.constant 0 : index
    %c0_29 = arith.constant 0 : index
    %31 = vector.load %arg1[%c4, %c0_28, %c0_29] : memref<9x8x4xbf16, #tpu.memory_space<vmem>>, vector<1x8x4xbf16>
    %32 = vector.shape_cast %31 : vector<1x8x4xbf16> to vector<8x4xbf16>
    %cst_30 = arith.constant dense<0.000000e+00> : vector<8x288xf32>
    %33 = tpu.matmul %32, %30, %cst_30 {dimension_numbers = #tpu.dot_dimension_numbers<[1], [0], [0], [1], [0, 0, 1, 1], [], []>} : vector<8x4xbf16>, vector<4x288xbf16>, vector<8x288xf32> -> vector<8x288xf32>
    %34 = arith.addf %28, %33 : vector<8x288xf32>
    %c0_31 = arith.constant 0 : index
    %c0_32 = arith.constant 0 : index
    %c20 = arith.constant 20 : index
    %35 = vector.load %arg0[%c0_31, %c0_32, %c20] : memref<2x4x326xbf16, #tpu.memory_space<vmem>>, vector<1x4x288xbf16>
    %36 = vector.shape_cast %35 : vector<1x4x288xbf16> to vector<4x288xbf16>
    %c5 = arith.constant 5 : index
    %c0_33 = arith.constant 0 : index
    %c0_34 = arith.constant 0 : index
    %37 = vector.load %arg1[%c5, %c0_33, %c0_34] : memref<9x8x4xbf16, #tpu.memory_space<vmem>>, vector<1x8x4xbf16>
    %38 = vector.shape_cast %37 : vector<1x8x4xbf16> to vector<8x4xbf16>
    %cst_35 = arith.constant dense<0.000000e+00> : vector<8x288xf32>
    %39 = tpu.matmul %38, %36, %cst_35 {dimension_numbers = #tpu.dot_dimension_numbers<[1], [0], [0], [1], [0, 0, 1, 1], [], []>} : vector<8x4xbf16>, vector<4x288xbf16>, vector<8x288xf32> -> vector<8x288xf32>
    %40 = arith.addf %34, %39 : vector<8x288xf32>
    %c0_36 = arith.constant 0 : index
    %c0_37 = arith.constant 0 : index
    %c36 = arith.constant 36 : index
    %41 = vector.load %arg0[%c0_36, %c0_37, %c36] : memref<2x4x326xbf16, #tpu.memory_space<vmem>>, vector<1x4x288xbf16>
    %42 = vector.shape_cast %41 : vector<1x4x288xbf16> to vector<4x288xbf16>
    %c6 = arith.constant 6 : index
    %c0_38 = arith.constant 0 : index
    %c0_39 = arith.constant 0 : index
    %43 = vector.load %arg1[%c6, %c0_38, %c0_39] : memref<9x8x4xbf16, #tpu.memory_space<vmem>>, vector<1x8x4xbf16>
    %44 = vector.shape_cast %43 : vector<1x8x4xbf16> to vector<8x4xbf16>
    %cst_40 = arith.constant dense<0.000000e+00> : vector<8x288xf32>
    %45 = tpu.matmul %44, %42, %cst_40 {dimension_numbers = #tpu.dot_dimension_numbers<[1], [0], [0], [1], [0, 0, 1, 1], [], []>} : vector<8x4xbf16>, vector<4x288xbf16>, vector<8x288xf32> -> vector<8x288xf32>
    %46 = arith.addf %40, %45 : vector<8x288xf32>
    %c0_41 = arith.constant 0 : index
    %c0_42 = arith.constant 0 : index
    %c37 = arith.constant 37 : index
    %47 = vector.load %arg0[%c0_41, %c0_42, %c37] : memref<2x4x326xbf16, #tpu.memory_space<vmem>>, vector<1x4x288xbf16>
    %48 = vector.shape_cast %47 : vector<1x4x288xbf16> to vector<4x288xbf16>
    %c7 = arith.constant 7 : index
    %c0_43 = arith.constant 0 : index
    %c0_44 = arith.constant 0 : index
    %49 = vector.load %arg1[%c7, %c0_43, %c0_44] : memref<9x8x4xbf16, #tpu.memory_space<vmem>>, vector<1x8x4xbf16>
    %50 = vector.shape_cast %49 : vector<1x8x4xbf16> to vector<8x4xbf16>
    %cst_45 = arith.constant dense<0.000000e+00> : vector<8x288xf32>
    %51 = tpu.matmul %50, %48, %cst_45 {dimension_numbers = #tpu.dot_dimension_numbers<[1], [0], [0], [1], [0, 0, 1, 1], [], []>} : vector<8x4xbf16>, vector<4x288xbf16>, vector<8x288xf32> -> vector<8x288xf32>
    %52 = arith.addf %46, %51 : vector<8x288xf32>
    %c0_46 = arith.constant 0 : index
    %c0_47 = arith.constant 0 : index
    %c38 = arith.constant 38 : index
    %53 = vector.load %arg0[%c0_46, %c0_47, %c38] : memref<2x4x326xbf16, #tpu.memory_space<vmem>>, vector<1x4x288xbf16>
    %54 = vector.shape_cast %53 : vector<1x4x288xbf16> to vector<4x288xbf16>
    %c8 = arith.constant 8 : index
    %c0_48 = arith.constant 0 : index
    %c0_49 = arith.constant 0 : index
    %55 = vector.load %arg1[%c8, %c0_48, %c0_49] : memref<9x8x4xbf16, #tpu.memory_space<vmem>>, vector<1x8x4xbf16>
    %56 = vector.shape_cast %55 : vector<1x8x4xbf16> to vector<8x4xbf16>
    %cst_50 = arith.constant dense<0.000000e+00> : vector<8x288xf32>
    %57 = tpu.matmul %56, %54, %cst_50 {dimension_numbers = #tpu.dot_dimension_numbers<[1], [0], [0], [1], [0, 0, 1, 1], [], []>} : vector<8x4xbf16>, vector<4x288xbf16>, vector<8x288xf32> -> vector<8x288xf32>
    %58 = arith.addf %52, %57 : vector<8x288xf32>
    %59 = arith.mulf %58, %2 : vector<8x288xf32>
    %cst_51 = arith.constant dense<0.000000e+00> : vector<8xf32>
    %60 = vector.multi_reduction <add>, %59, %cst_51 [1] : vector<8x288xf32> to vector<8xf32>
    %61 = vector.shape_cast %60 : vector<8xf32> to vector<8x1xf32>
    %62 = arith.addf %3, %61 : vector<8x1xf32>
    %cst_52 = arith.constant 0.000000e+00 : f32
    %63 = vector.broadcast %cst_52 : f32 to vector<8x288xf32>
    %c1_53 = arith.constant 1 : index
    %c0_54 = arith.constant 0 : index
    %c0_55 = arith.constant 0 : index
    %64 = vector.load %arg0[%c1_53, %c0_54, %c0_55] : memref<2x4x326xbf16, #tpu.memory_space<vmem>>, vector<1x4x288xbf16>
    %65 = vector.shape_cast %64 : vector<1x4x288xbf16> to vector<4x288xbf16>
    %c0_56 = arith.constant 0 : index
    %c0_57 = arith.constant 0 : index
    %c0_58 = arith.constant 0 : index
    %66 = vector.load %arg1[%c0_56, %c0_57, %c0_58] : memref<9x8x4xbf16, #tpu.memory_space<vmem>>, vector<1x8x4xbf16>
    %67 = vector.shape_cast %66 : vector<1x8x4xbf16> to vector<8x4xbf16>
    %cst_59 = arith.constant dense<0.000000e+00> : vector<8x288xf32>
    %68 = tpu.matmul %67, %65, %cst_59 {dimension_numbers = #tpu.dot_dimension_numbers<[1], [0], [0], [1], [0, 0, 1, 1], [], []>} : vector<8x4xbf16>, vector<4x288xbf16>, vector<8x288xf32> -> vector<8x288xf32>
    %69 = arith.addf %63, %68 : vector<8x288xf32>
    %c1_60 = arith.constant 1 : index
    %c0_61 = arith.constant 0 : index
    %c1_62 = arith.constant 1 : index
    %70 = vector.load %arg0[%c1_60, %c0_61, %c1_62] : memref<2x4x326xbf16, #tpu.memory_space<vmem>>, vector<1x4x288xbf16>
    %71 = vector.shape_cast %70 : vector<1x4x288xbf16> to vector<4x288xbf16>
    %c1_63 = arith.constant 1 : index
    %c0_64 = arith.constant 0 : index
    %c0_65 = arith.constant 0 : index
    %72 = vector.load %arg1[%c1_63, %c0_64, %c0_65] : memref<9x8x4xbf16, #tpu.memory_space<vmem>>, vector<1x8x4xbf16>
    %73 = vector.shape_cast %72 : vector<1x8x4xbf16> to vector<8x4xbf16>
    %cst_66 = arith.constant dense<0.000000e+00> : vector<8x288xf32>
    %74 = tpu.matmul %73, %71, %cst_66 {dimension_numbers = #tpu.dot_dimension_numbers<[1], [0], [0], [1], [0, 0, 1, 1], [], []>} : vector<8x4xbf16>, vector<4x288xbf16>, vector<8x288xf32> -> vector<8x288xf32>
    %75 = arith.addf %69, %74 : vector<8x288xf32>
    %c1_67 = arith.constant 1 : index
    %c0_68 = arith.constant 0 : index
    %c2_69 = arith.constant 2 : index
    %76 = vector.load %arg0[%c1_67, %c0_68, %c2_69] : memref<2x4x326xbf16, #tpu.memory_space<vmem>>, vector<1x4x288xbf16>
    %77 = vector.shape_cast %76 : vector<1x4x288xbf16> to vector<4x288xbf16>
    %c2_70 = arith.constant 2 : index
    %c0_71 = arith.constant 0 : index
    %c0_72 = arith.constant 0 : index
    %78 = vector.load %arg1[%c2_70, %c0_71, %c0_72] : memref<9x8x4xbf16, #tpu.memory_space<vmem>>, vector<1x8x4xbf16>
    %79 = vector.shape_cast %78 : vector<1x8x4xbf16> to vector<8x4xbf16>
    %cst_73 = arith.constant dense<0.000000e+00> : vector<8x288xf32>
    %80 = tpu.matmul %79, %77, %cst_73 {dimension_numbers = #tpu.dot_dimension_numbers<[1], [0], [0], [1], [0, 0, 1, 1], [], []>} : vector<8x4xbf16>, vector<4x288xbf16>, vector<8x288xf32> -> vector<8x288xf32>
    %81 = arith.addf %75, %80 : vector<8x288xf32>
    %c1_74 = arith.constant 1 : index
    %c0_75 = arith.constant 0 : index
    %c18_76 = arith.constant 18 : index
    %82 = vector.load %arg0[%c1_74, %c0_75, %c18_76] : memref<2x4x326xbf16, #tpu.memory_space<vmem>>, vector<1x4x288xbf16>
    %83 = vector.shape_cast %82 : vector<1x4x288xbf16> to vector<4x288xbf16>
    %c3_77 = arith.constant 3 : index
    %c0_78 = arith.constant 0 : index
    %c0_79 = arith.constant 0 : index
    %84 = vector.load %arg1[%c3_77, %c0_78, %c0_79] : memref<9x8x4xbf16, #tpu.memory_space<vmem>>, vector<1x8x4xbf16>
    %85 = vector.shape_cast %84 : vector<1x8x4xbf16> to vector<8x4xbf16>
    %cst_80 = arith.constant dense<0.000000e+00> : vector<8x288xf32>
    %86 = tpu.matmul %85, %83, %cst_80 {dimension_numbers = #tpu.dot_dimension_numbers<[1], [0], [0], [1], [0, 0, 1, 1], [], []>} : vector<8x4xbf16>, vector<4x288xbf16>, vector<8x288xf32> -> vector<8x288xf32>
    %87 = arith.addf %81, %86 : vector<8x288xf32>
    %c1_81 = arith.constant 1 : index
    %c0_82 = arith.constant 0 : index
    %c19_83 = arith.constant 19 : index
    %88 = vector.load %arg0[%c1_81, %c0_82, %c19_83] : memref<2x4x326xbf16, #tpu.memory_space<vmem>>, vector<1x4x288xbf16>
    %89 = vector.shape_cast %88 : vector<1x4x288xbf16> to vector<4x288xbf16>
    %c4_84 = arith.constant 4 : index
    %c0_85 = arith.constant 0 : index
    %c0_86 = arith.constant 0 : index
    %90 = vector.load %arg1[%c4_84, %c0_85, %c0_86] : memref<9x8x4xbf16, #tpu.memory_space<vmem>>, vector<1x8x4xbf16>
    %91 = vector.shape_cast %90 : vector<1x8x4xbf16> to vector<8x4xbf16>
    %cst_87 = arith.constant dense<0.000000e+00> : vector<8x288xf32>
    %92 = tpu.matmul %91, %89, %cst_87 {dimension_numbers = #tpu.dot_dimension_numbers<[1], [0], [0], [1], [0, 0, 1, 1], [], []>} : vector<8x4xbf16>, vector<4x288xbf16>, vector<8x288xf32> -> vector<8x288xf32>
    %93 = arith.addf %87, %92 : vector<8x288xf32>
    %c1_88 = arith.constant 1 : index
    %c0_89 = arith.constant 0 : index
    %c20_90 = arith.constant 20 : index
    %94 = vector.load %arg0[%c1_88, %c0_89, %c20_90] : memref<2x4x326xbf16, #tpu.memory_space<vmem>>, vector<1x4x288xbf16>
    %95 = vector.shape_cast %94 : vector<1x4x288xbf16> to vector<4x288xbf16>
    %c5_91 = arith.constant 5 : index
    %c0_92 = arith.constant 0 : index
    %c0_93 = arith.constant 0 : index
    %96 = vector.load %arg1[%c5_91, %c0_92, %c0_93] : memref<9x8x4xbf16, #tpu.memory_space<vmem>>, vector<1x8x4xbf16>
    %97 = vector.shape_cast %96 : vector<1x8x4xbf16> to vector<8x4xbf16>
    %cst_94 = arith.constant dense<0.000000e+00> : vector<8x288xf32>
    %98 = tpu.matmul %97, %95, %cst_94 {dimension_numbers = #tpu.dot_dimension_numbers<[1], [0], [0], [1], [0, 0, 1, 1], [], []>} : vector<8x4xbf16>, vector<4x288xbf16>, vector<8x288xf32> -> vector<8x288xf32>
    %99 = arith.addf %93, %98 : vector<8x288xf32>
    %c1_95 = arith.constant 1 : index
    %c0_96 = arith.constant 0 : index
    %c36_97 = arith.constant 36 : index
    %100 = vector.load %arg0[%c1_95, %c0_96, %c36_97] : memref<2x4x326xbf16, #tpu.memory_space<vmem>>, vector<1x4x288xbf16>
    %101 = vector.shape_cast %100 : vector<1x4x288xbf16> to vector<4x288xbf16>
    %c6_98 = arith.constant 6 : index
    %c0_99 = arith.constant 0 : index
    %c0_100 = arith.constant 0 : index
    %102 = vector.load %arg1[%c6_98, %c0_99, %c0_100] : memref<9x8x4xbf16, #tpu.memory_space<vmem>>, vector<1x8x4xbf16>
    %103 = vector.shape_cast %102 : vector<1x8x4xbf16> to vector<8x4xbf16>
    %cst_101 = arith.constant dense<0.000000e+00> : vector<8x288xf32>
    %104 = tpu.matmul %103, %101, %cst_101 {dimension_numbers = #tpu.dot_dimension_numbers<[1], [0], [0], [1], [0, 0, 1, 1], [], []>} : vector<8x4xbf16>, vector<4x288xbf16>, vector<8x288xf32> -> vector<8x288xf32>
    %105 = arith.addf %99, %104 : vector<8x288xf32>
    %c1_102 = arith.constant 1 : index
    %c0_103 = arith.constant 0 : index
    %c37_104 = arith.constant 37 : index
    %106 = vector.load %arg0[%c1_102, %c0_103, %c37_104] : memref<2x4x326xbf16, #tpu.memory_space<vmem>>, vector<1x4x288xbf16>
    %107 = vector.shape_cast %106 : vector<1x4x288xbf16> to vector<4x288xbf16>
    %c7_105 = arith.constant 7 : index
    %c0_106 = arith.constant 0 : index
    %c0_107 = arith.constant 0 : index
    %108 = vector.load %arg1[%c7_105, %c0_106, %c0_107] : memref<9x8x4xbf16, #tpu.memory_space<vmem>>, vector<1x8x4xbf16>
    %109 = vector.shape_cast %108 : vector<1x8x4xbf16> to vector<8x4xbf16>
    %cst_108 = arith.constant dense<0.000000e+00> : vector<8x288xf32>
    %110 = tpu.matmul %109, %107, %cst_108 {dimension_numbers = #tpu.dot_dimension_numbers<[1], [0], [0], [1], [0, 0, 1, 1], [], []>} : vector<8x4xbf16>, vector<4x288xbf16>, vector<8x288xf32> -> vector<8x288xf32>
    %111 = arith.addf %105, %110 : vector<8x288xf32>
    %c1_109 = arith.constant 1 : index
    %c0_110 = arith.constant 0 : index
    %c38_111 = arith.constant 38 : index
    %112 = vector.load %arg0[%c1_109, %c0_110, %c38_111] : memref<2x4x326xbf16, #tpu.memory_space<vmem>>, vector<1x4x288xbf16>
    %113 = vector.shape_cast %112 : vector<1x4x288xbf16> to vector<4x288xbf16>
    %c8_112 = arith.constant 8 : index
    %c0_113 = arith.constant 0 : index
    %c0_114 = arith.constant 0 : index
    %114 = vector.load %arg1[%c8_112, %c0_113, %c0_114] : memref<9x8x4xbf16, #tpu.memory_space<vmem>>, vector<1x8x4xbf16>
    %115 = vector.shape_cast %114 : vector<1x8x4xbf16> to vector<8x4xbf16>
    %cst_115 = arith.constant dense<0.000000e+00> : vector<8x288xf32>
    %116 = tpu.matmul %115, %113, %cst_115 {dimension_numbers = #tpu.dot_dimension_numbers<[1], [0], [0], [1], [0, 0, 1, 1], [], []>} : vector<8x4xbf16>, vector<4x288xbf16>, vector<8x288xf32> -> vector<8x288xf32>
    %117 = arith.addf %111, %116 : vector<8x288xf32>
    %118 = arith.mulf %117, %2 : vector<8x288xf32>
    %cst_116 = arith.constant dense<0.000000e+00> : vector<8xf32>
    %119 = vector.multi_reduction <add>, %118, %cst_116 [1] : vector<8x288xf32> to vector<8xf32>
    %120 = vector.shape_cast %119 : vector<8xf32> to vector<8x1xf32>
    %121 = arith.addf %62, %120 : vector<8x1xf32>
    %cst_117 = arith.constant 0.001953125 : f32
    %122 = vector.broadcast %cst_117 : f32 to vector<8x1xf32>
    %123 = arith.mulf %121, %122 : vector<8x1xf32>
    %cst_118 = arith.constant 0.000000e+00 : f32
    %124 = vector.broadcast %cst_118 : f32 to vector<8x1xf32>
    %125 = vector.broadcast %123 : vector<8x1xf32> to vector<8x288xf32>
    %126 = arith.subf %58, %125 : vector<8x288xf32>
    %127 = arith.mulf %126, %126 : vector<8x288xf32>
    %128 = arith.mulf %127, %2 : vector<8x288xf32>
    %cst_119 = arith.constant dense<0.000000e+00> : vector<8xf32>
    %129 = vector.multi_reduction <add>, %128, %cst_119 [1] : vector<8x288xf32> to vector<8xf32>
    %130 = vector.shape_cast %129 : vector<8xf32> to vector<8x1xf32>
    %131 = arith.addf %124, %130 : vector<8x1xf32>
    %132 = vector.broadcast %123 : vector<8x1xf32> to vector<8x288xf32>
    %133 = arith.subf %117, %132 : vector<8x288xf32>
    %134 = arith.mulf %133, %133 : vector<8x288xf32>
    %135 = arith.mulf %134, %2 : vector<8x288xf32>
    %cst_120 = arith.constant dense<0.000000e+00> : vector<8xf32>
    %136 = vector.multi_reduction <add>, %135, %cst_120 [1] : vector<8x288xf32> to vector<8xf32>
    %137 = vector.shape_cast %136 : vector<8xf32> to vector<8x1xf32>
    %138 = arith.addf %131, %137 : vector<8x1xf32>
    %cst_121 = arith.constant 0.001953125 : f32
    %139 = vector.broadcast %cst_121 : f32 to vector<8x1xf32>
    %140 = arith.mulf %138, %139 : vector<8x1xf32>
    %c0_122 = arith.constant 0 : index
    %c0_123 = arith.constant 0 : index
    %141 = vector.load %arg2[%c0_122, %c0_123] : memref<8x2xf32, #tpu.memory_space<vmem>>, vector<8x1xf32>
    %cst_124 = arith.constant 9.99999974E-6 : f32
    %142 = vector.broadcast %cst_124 : f32 to vector<8x1xf32>
    %143 = arith.addf %140, %142 : vector<8x1xf32>
    %144 = math.rsqrt %143 : vector<8x1xf32>
    %145 = arith.mulf %141, %144 : vector<8x1xf32>
    %c0_125 = arith.constant 0 : index
    %c1_126 = arith.constant 1 : index
    %146 = vector.load %arg2[%c0_125, %c1_126] : memref<8x2xf32, #tpu.memory_space<vmem>>, vector<8x1xf32>
    %147 = vector.broadcast %145 : vector<8x1xf32> to vector<8x288xf32>
    %148 = arith.mulf %126, %147 : vector<8x288xf32>
    %149 = vector.broadcast %146 : vector<8x1xf32> to vector<8x288xf32>
    %150 = arith.addf %148, %149 : vector<8x288xf32>
    %cst_127 = arith.constant 0.000000e+00 : f32
    %151 = vector.broadcast %cst_127 : f32 to vector<8x288xf32>
    %152 = arith.maximumf %150, %151 : vector<8x288xf32>
    %c0_128 = arith.constant 0 : index
    %c0_129 = arith.constant 0 : index
    %c0_130 = arith.constant 0 : index
    %153 = vector.load %arg4[%c0_128, %c0_129, %c0_130] : memref<2x8x288xf32, #tpu.memory_space<vmem>>, vector<1x8x288xf32>
    %154 = vector.shape_cast %153 : vector<1x8x288xf32> to vector<8x288xf32>
    %155 = vector.shape_cast %152 : vector<8x288xf32> to vector<1x8x288xf32>
    tpu.vector_store %arg4[%c0_128, %c0_129, %c0_130], %155 {strides = array<i32>} : memref<2x8x288xf32, #tpu.memory_space<vmem>>, vector<1x8x288xf32>,
    %156 = vector.broadcast %145 : vector<8x1xf32> to vector<8x288xf32>
    %157 = arith.mulf %133, %156 : vector<8x288xf32>
    %158 = vector.broadcast %146 : vector<8x1xf32> to vector<8x288xf32>
    %159 = arith.addf %157, %158 : vector<8x288xf32>
    %cst_131 = arith.constant 0.000000e+00 : f32
    %160 = vector.broadcast %cst_131 : f32 to vector<8x288xf32>
    %161 = arith.maximumf %159, %160 : vector<8x288xf32>
    %c1_132 = arith.constant 1 : index
    %c0_133 = arith.constant 0 : index
    %c0_134 = arith.constant 0 : index
    %162 = vector.load %arg4[%c1_132, %c0_133, %c0_134] : memref<2x8x288xf32, #tpu.memory_space<vmem>>, vector<1x8x288xf32>
    %163 = vector.shape_cast %162 : vector<1x8x288xf32> to vector<8x288xf32>
    %164 = vector.shape_cast %161 : vector<8x288xf32> to vector<1x8x288xf32>
    tpu.vector_store %arg4[%c1_132, %c0_133, %c0_134], %164 {strides = array<i32>} : memref<2x8x288xf32, #tpu.memory_space<vmem>>, vector<1x8x288xf32>,
    return
  }
}

</mosaic_0001>

<bundles_post_ra>
// kernel: tpu_custom_call.1
= control target key start
LH: loop header
LB: loop body
LE: loop exit
PB: predicated region body
PF: predicated region fallthrough
CT: control target
= control target key end

     0   :  { %v21_v0 = vlaneseq  ;;  %v2677_v2 = vmov 1983009808   ;;  %v2678_v8 = vmov 0.0   ;;  %vm2679_vm0 = vmmov 0   ;;  %s3182_s0 = inlined_call_operand.vmem [shape: bf16[2,4,326], index: 0, kind: input, shape index: {}]   ;;  %s3183_s1 = inlined_call_operand.vmem [shape: bf16[9,8,4], index: 1, kind: input, shape index: {}]   ;;  %s3184_s2 = inlined_call_operand.vmem [shape: f32[8,2], index: 2, kind: input, shape index: {}]   ;;  %s3185_s3 = inlined_call_operand.vmem [shape: f32[1,288], index: 3, kind: input, shape index: {}]   ;;  %s3186_s4 = inlined_call_operand.hbm [shape: f32[2,8,288], index: 4, kind: output, shape index: {}]  }
   0x1   :  { %v36_v1 = vld [vmem:[%s3182_s0] sm:$0x3f]  ;;  %v43_v3 = vunpack.c.l.s4 %v2677_v2  ;;  %2381 = vmatprep.subr.bf16.mxu1 %v2678_v8  ;;  %2383 = vmatprep.mubr.msk.bf16.mxu1 %vm2679_vm0, %v2678_v8 }
   0x2   :  { %v2721_v4 = vshrl.u32 %v21_v0, 7  ;;  %v41_v5 = vcombine.high %v36_v1, %v36_v1  ;;  %v254_v9 = vld [vmem:[%s3182_s0] sm:$0x3f] }
   0x3   :  { %v44_v6 = vunpack.c.0.s8 %v43_v3 }
   0x5   :  { %v2724_v7 = vsub.s32 %v44_v6, %v2721_v4 }
   0x7   :  { %v2731_v10 = vrot.slane %v41_v5, %v2724_v7  ;;  %v2734_v11 = vrot.slane %v36_v1, %v2724_v7 }
   0x8   :  { %9 = vsyncpa [#allocation3], 0  ;;  %v2680_v12 = vmov 0   ;;  %s2681_s19 = smov 127   ;;  %v265_v14 = vrot.slane %v254_v9, %v2724_v7  ;;  %v258_v15 = vcombine.high %v254_v9, %v254_v9  ;;  %v379_v16 = vld [vmem:[%s3182_s0] sm:$0x3f] }
   0x9   :  { %112 = vmatprep.mubr.bf16.mxu0 %v2680_v12  ;;  %61 = vrot.lane.b32.xlu1 %v2731_v10, %s2681_s19  ;;  %v2745_v13 = vcombine.high %v2734_v11, %v2734_v11  ;;  %s2682_s22 = smov 126   ;;  %v390_v19 = vrot.slane %v379_v16, %v2724_v7  ;;  %v383_v21 = vcombine.high %v379_v16, %v379_v16  ;;  %v504_v22 = vld [vmem:[%s3182_s0] sm:$0x3f]  ;;  %s2683_s25 = smov 110   ;;  %v2310_v46 = vld [vmem:[%s3182_s0 + $0x6] sm:$0x3f] }
   0xa   :  { %57 = vrot.lane.b32.xlu0 %v2734_v11, %s2681_s19  ;;  %2633 = vset.pattern.permute.xlu1 %v2680_v12  ;;  %v273_v17 = vcombine.high %v265_v14, %v265_v14  ;;  %v272_v18 = vrot.slane %v258_v15, %v2724_v7  ;;  %v515_v24 = vrot.slane %v504_v22, %v2724_v7  ;;  %v629_v26 = vld [vmem:[%s3182_s0] sm:$0x3f]  ;;  %s2684_s28 = smov 109   ;;  %s2685_s5 = smov 108   ;;  %v2317_v52 = vld [vmem:[%s3182_s0 + $0x6] sm:$0x3f] }
   0xb   :  { %v398_v20 = vcombine.high %v390_v19, %v390_v19  ;;  %v397_v23 = vrot.slane %v383_v21, %v2724_v7  ;;  %v508_v25 = vcombine.high %v504_v22, %v504_v22  ;;  %v640_v29 = vrot.slane %v629_v26, %v2724_v7  ;;  %v754_v32 = vld [vmem:[%s3182_s0] sm:$0x3f]  ;;  %s2686_s8 = smov 92   ;;  %s2687_s11 = smov 91   ;;  %v2321_v56 = vld [vmem:[%s3182_s0 + $0x6] sm:$0x3f] }
   0xc   :  { %v523_v27 = vcombine.high %v515_v24, %v515_v24  ;;  %v633_v31 = vcombine.high %v629_v26, %v629_v26  ;;  %v765_v34 = vrot.slane %v754_v32, %v2724_v7  ;;  %v758_v35 = vcombine.high %v754_v32, %v754_v32  ;;  %v879_v36 = vld [vmem:[%s3182_s0] sm:$0x3f]  ;;  %s2688_s14 = smov 90   ;;  %v2325_v62 = vld [vmem:[%s3182_s0 + $0x6] sm:$0x3f] }
   0xd   :  { %274 = vrot.lane.b32.xlu1 %v265_v14, %s2682_s22  ;;  %v522_v28 = vrot.slane %v508_v25, %v2724_v7  ;;  %v648_v30 = vcombine.high %v640_v29, %v640_v29  ;;  %v890_v39 = vrot.slane %v879_v36, %v2724_v7  ;;  %v883_v41 = vcombine.high %v879_v36, %v879_v36  ;;  %v1004_v42 = vld [vmem:[%s3182_s0] sm:$0x3f]  ;;  %v2329_v2 = vld [vmem:[%s3182_s0 + $0x6] sm:$0x3f] }
   0xe   :  { %59 = vrot.lane.b32.xlu0 %v2745_v13, %s2681_s19  ;;  %v647_v33 = vrot.slane %v633_v31, %v2724_v7  ;;  %v773_v37 = vcombine.high %v765_v34, %v765_v34  ;;  %v772_v38 = vrot.slane %v758_v35, %v2724_v7  ;;  %v1015_v44 = vrot.slane %v1004_v42, %v2724_v7  ;;  %v2333_v15 = vld [vmem:[%s3182_s0 + $0x6] sm:$0x3f] }
   0xf   :  { %v898_v40 = vcombine.high %v890_v39, %v890_v39  ;;  %v897_v43 = vrot.slane %v883_v41, %v2724_v7  ;;  %v1008_v45 = vcombine.high %v1004_v42, %v1004_v42  ;;  %v2805_v49 = vrot.slane %v2310_v46, %v2724_v7  ;;  %v2341_v25 = vld [vmem:[%s3182_s0 + $0x6] sm:$0x3f] }
  0x10   :  { %v1023_v47 = vcombine.high %v1015_v44, %v1015_v44  ;;  %v1142_v51 = vcombine.high %v2310_v46, %v2310_v46  ;;  %v1355_v54 = vrot.slane %v2317_v52, %v2724_v7  ;;  %v1348_v55 = vcombine.high %v2317_v52, %v2317_v52  ;;  %v2926_v52 = vld [vmem:[%s3183_s1 + $0x8] sm:$0xf] }
  0x11   :  { %278 = vrot.lane.b32.xlu1 %v272_v18, %s2682_s22  ;;  %v1022_v48 = vrot.slane %v1008_v45, %v2724_v7  ;;  %v2811_v50 = vcombine.high %v2805_v49, %v2805_v49  ;;  %v1474_v59 = vrot.slane %v2321_v56, %v2724_v7  ;;  %v1467_v61 = vcombine.high %v2321_v56, %v2321_v56 }
  0x12   :  { %276 = vrot.lane.b32.xlu0 %v273_v17, %s2682_s22  ;;  %v2821_v53 = vrot.slane %v1142_v51, %v2724_v7  ;;  %v1363_v57 = vcombine.high %v1355_v54, %v1355_v54  ;;  %v1362_v58 = vrot.slane %v1348_v55, %v2724_v7  ;;  %v1593_v0 = vrot.slane %v2325_v62, %v2724_v7 }
  0x13   :  { %v1482_v60 = vcombine.high %v1474_v59, %v1474_v59  ;;  %v1481_v63 = vrot.slane %v1467_v61, %v2724_v7  ;;  %v1586_v1 = vcombine.high %v2325_v62, %v2325_v62  ;;  %v1712_v6 = vrot.slane %v2329_v2, %v2724_v7  ;;  %v2944_v61 = vld [vmem:[%s3183_s1 + $0xc] sm:$0xf] }
  0x14   :  { %v1601_v3 = vcombine.high %v1593_v0, %v1593_v0  ;;  %v1705_v14 = vcombine.high %v2329_v2, %v2329_v2  ;;  %v1831_v17 = vrot.slane %v2333_v15, %v2724_v7  ;;  %v1824_v18 = vcombine.high %v2333_v15, %v2333_v15 }
  0x15   :  { %401 = vrot.lane.b32.xlu1 %v398_v20, %s2683_s25  ;;  %v1600_v5 = vrot.slane %v1586_v1, %v2724_v7  ;;  %v1720_v9 = vcombine.high %v1712_v6, %v1712_v6  ;;  %vm70_vm1 = vcmask 1041408   ;;  %vm66_vm2 = vcmask 31744  }
  0x16   :  { %399 = vrot.lane.b32.xlu0 %v390_v19, %s2683_s25  ;;  %v1719_v16 = vrot.slane %v1705_v14, %v2724_v7  ;;  %v2337_v19 = vld [vmem:[%s3182_s0 + $0x6] sm:$0x3f]  ;;  %v1839_v20 = vcombine.high %v1831_v17, %v1831_v17  ;;  %v1838_v21 = vrot.slane %v1824_v18, %v2724_v7  ;;  %vm63_vm3 = vcmask 1039360  }
  0x17   :  { %v1950_v22 = vrot.slane %v2337_v19, %v2724_v7  ;;  %vm280_vm4 = vcmask 1031168   ;;  %vm405_vm5 = vcmask 900096   ;;  %vm530_vm6 = vcmask 891904  }
  0x18   :  { %vm655_vm7 = vcmask 883712   ;;  %vm780_vm8 = vcmask 752640   ;;  %vm905_vm9 = vcmask 744448   ;;  %vm1030_vm10 = vcmask 736256  }
  0x19   :  { %524 = vrot.lane.b32.xlu1 %v515_v24, %s2684_s28  ;;  %v1943_v24 = vcombine.high %v2337_v19, %v2337_v19  ;;  %vm1133_vm11 = vcmask 261120  }
  0x1a   :  { %403 = vrot.lane.b32.xlu0 %v397_v23, %s2683_s25  ;;  %v1958_v23 = vcombine.high %v1950_v22, %v1950_v22 }
  0x1b   :  { %v1957_v26 = vrot.slane %v1943_v24, %v2724_v7 }
  0x1d   :  { %528 = vrot.lane.b32.xlu1 %v522_v28, %s2684_s28  ;;  %v2062_v28 = vcombine.high %v2341_v25, %v2341_v25 }
  0x1e   :  { %526 = vrot.lane.b32.xlu0 %v523_v27, %s2684_s28  ;;  %v2069_v27 = vrot.slane %v2341_v25, %v2724_v7 }
  0x21   :  { %651 = vrot.lane.b32.xlu1 %v648_v30, %s2685_s5  ;;  %v2076_v30 = vrot.slane %v2062_v28, %v2724_v7  ;;  %v171_v7 = vsel %vm70_vm1, %v2731_v10, 0  ;;  %v165_v10 = vsel %vm70_vm1, %v2734_v11, 0  ;;  %v2998_v28 = vld [vmem:[%s3183_s1 + $0x18] sm:$0xf] }
  0x22   :  { %649 = vrot.lane.b32.xlu0 %v640_v29, %s2685_s5  ;;  %v2077_v29 = vcombine.high %v2069_v27, %v2069_v27 }
  0x25   :  { %774 = vrot.lane.b32.xlu1 %v765_v34, %s2686_s8  ;;  %v2882_v34 = vld [vmem:[%s3183_s1 + $0x4] sm:$0xf] }
  0x26   :  { %653 = vrot.lane.b32.xlu0 %v647_v33, %s2685_s5 }
  0x29   :  { %778 = vrot.lane.b32.xlu1 %v772_v38, %s2686_s8 }
  0x2a   :  { %776 = vrot.lane.b32.xlu0 %v773_v37, %s2686_s8 }
  0x2d   :  { %901 = vrot.lane.b32.xlu1 %v898_v40, %s2687_s11 }
  0x2e   :  { %899 = vrot.lane.b32.xlu0 %v890_v39, %s2687_s11 }
  0x31   :  { %1024 = vrot.lane.b32.xlu1 %v1015_v44, %s2688_s14 }
  0x32   :  { %903 = vrot.lane.b32.xlu0 %v897_v43, %s2687_s11 }
  0x35   :  { %1028 = vrot.lane.b32.xlu1 %v1022_v48, %s2688_s14 }
  0x36   :  { %1026 = vrot.lane.b32.xlu0 %v1023_v47, %s2688_s14 }
  0x39   :  { %1160 = vrot.lane.b32.xlu1 %v2811_v50, %s2681_s19 }
  0x3a   :  { %1158 = vrot.lane.b32.xlu0 %v2805_v49, %s2681_s19 }
  0x3d   :  { %1364 = vrot.lane.b32.xlu1 %v1355_v54, %s2682_s22 }
  0x3e   :  { %1162 = vrot.lane.b32.xlu0 %v2821_v53, %s2681_s19 }
  0x41   :  { %1368 = vrot.lane.b32.xlu1 %v1362_v58, %s2682_s22 }
  0x42   :  { %1366 = vrot.lane.b32.xlu0 %v1363_v57, %s2682_s22 }
  0x45   :  { %1485 = vrot.lane.b32.xlu1 %v1482_v60, %s2683_s25 }
  0x46   :  { %1483 = vrot.lane.b32.xlu0 %v1474_v59, %s2683_s25 }
  0x49   :  { %1602 = vrot.lane.b32.xlu1 %v1593_v0, %s2684_s28 }
  0x4a   :  { %1487 = vrot.lane.b32.xlu0 %v1481_v63, %s2683_s25 }
  0x4d   :  { %1606 = vrot.lane.b32.xlu1 %v1600_v5, %s2684_s28 }
  0x4e   :  { %1604 = vrot.lane.b32.xlu0 %v1601_v3, %s2684_s28 }
  0x51   :  { %1723 = vrot.lane.b32.xlu1 %v1720_v9, %s2685_s5 }
  0x52   :  { %1721 = vrot.lane.b32.xlu0 %v1712_v6, %s2685_s5  ;;  %v2962_v6 = vld [vmem:[%s3183_s1 + $0x10] sm:$0xf] }
  0x55   :  { %1840 = vrot.lane.b32.xlu1 %v1831_v17, %s2686_s8 }
  0x56   :  { %1725 = vrot.lane.b32.xlu0 %v1719_v16, %s2685_s5 }
  0x59   :  { %1844 = vrot.lane.b32.xlu1 %v1838_v21, %s2686_s8 }
  0x5a   :  { %1842 = vrot.lane.b32.xlu0 %v1839_v20, %s2686_s8  ;;  %v2980_v20 = vld [vmem:[%s3183_s1 + $0x14] sm:$0xf] }
  0x5d   :  { %1961 = vrot.lane.b32.xlu1 %v1958_v23, %s2687_s11 }
  0x5e   :  { %1959 = vrot.lane.b32.xlu0 %v1950_v22, %s2687_s11 }
  0x61   :  { %2078 = vrot.lane.b32.xlu1 %v2069_v27, %s2688_s14 }
  0x62   :  { %1963 = vrot.lane.b32.xlu0 %v1957_v26, %s2687_s11 }
  0x65   :  { %2082 = vrot.lane.b32.xlu1 %v2076_v30, %s2688_s14 }
  0x66   :  { %2080 = vrot.lane.b32.xlu0 %v2077_v29, %s2688_s14 }
  0x7b   :  { %v62_v31 = vpop.permute.xlu1 %61 }
  0x7c   :  { %v58_v32 = vpop.permute.xlu0 %57  ;;  %v78_v33 = vsel %vm70_vm1, %v62_v31, 0 }
  0x7d   :  { %2382 = vmatpush3.bf16.msra.mxu1 %v78_v33 }
  0x7e   :  { %2387 = vmatprep.subr.bf16.mxu1 %v2678_v8 }
  0x7f   :  { %v275_v36 = vpop.permute.xlu1 %274 }
  0x80   :  { %v60_v35 = vpop.permute.xlu0 %59  ;;  %2384 = vmatmul.mubr.msk.bf16.vlgmr.msra.gmra.mrb[0].mxu1 %vm66_vm2, %v2882_v34 }
  0x81   :  { %v65_v37 = vsel %vm63_vm3, %v60_v35, %v62_v31  ;;  %v64_v38 = vsel %vm63_vm3, %v58_v32, %v60_v35  ;;  %2388 = vmatpush3.bf16.msra.mxu1 %v171_v7  ;;  %2389 = vmatprep.mubr.msk.bf16.mxu1 %vm2679_vm0, %v2678_v8 }
  0x82   :  { %2276 = vmatprep.subr.msk.bf16.mxu0 %vm70_vm1, %v65_v37  ;;  %v72_v39 = vsel %vm70_vm1, %v64_v38, 0  ;;  %2393 = vmatprep.subr.bf16.mxu1 %v2678_v8 }
  0x83   :  { %81 = vmatpush1.bf16.msra.mxu0 %v72_v39  ;;  %v279_v41 = vpop.permute.xlu1 %278 }
  0x84   :  { %2279 = vmatprep.subr.msk.bf16.mxu0 %vm70_vm1, %v2745_v13  ;;  %v277_v40 = vpop.permute.xlu0 %276  ;;  %v2908_v13 = vld [vmem:[%s3183_s1] sm:$0xf]  ;;  %v293_v11 = vsel %vm70_vm1, %v279_v41, 0 }
  0x85   :  { %v282_v42 = vsel %vm280_vm4, %v277_v40, %v279_v41  ;;  %v281_v44 = vsel %vm280_vm4, %v275_v36, %v277_v40  ;;  %v3016_v36 = vld [vmem:[%s3183_s1 + $0x1c] sm:$0xf] }
  0x86   :  { %2277 = vmatmul.mubr.msk.bf16.vlgmr.msra.gmra.mrb[0].mxu0 %vm66_vm2, %v2882_v34  ;;  %v287_v47 = vsel %vm70_vm1, %v281_v44, 0 }
  0x87   :  { %174 = vmatpush1.bf16.msra.mxu0 %v165_v10  ;;  %205 = vmatprep.mubr.bf16.mxu0 %v2680_v12  ;;  %v402_v45 = vpop.permute.xlu1 %401 }
  0x88   :  { %2283 = vmatprep.subr.msk.bf16.mxu0 %vm70_vm1, %v282_v42  ;;  %v400_v43 = vpop.permute.xlu0 %399  ;;  %v3034_v42 = vld [vmem:[%s3183_s1 + $0x20] sm:$0xf] }
  0x89   :  { %v406_v55 = vsel %vm405_vm5, %v400_v43, %v402_v45 }
  0x8a   :  { %v412_v58 = vsel %vm70_vm1, %v406_v55, 0 }
  0x8b   :  { %v525_v51 = vpop.permute.xlu1 %524 }
  0x8c   :  { %2390 = vmatmul.mubr.msk.bf16.vlgmr.msra.gmra.mrb[0].mxu1 %vm66_vm2, %v2908_v13  ;;  %v404_v46 = vpop.permute.xlu0 %403 }
  0x8d   :  { %2394 = vmatpush3.bf16.msra.mxu1 %v293_v11  ;;  %2395 = vmatprep.mubr.msk.bf16.mxu1 %vm2679_vm0, %v2678_v8  ;;  %v407_v48 = vsel %vm405_vm5, %v402_v45, %v404_v46  ;;  %v418_v54 = vsel %vm70_vm1, %v404_v46, 0  ;;  %v1263_v46 = vsel %vm70_vm1, %v2821_v53, 0 }
  0x8e   :  { %2399 = vmatprep.subr.bf16.mxu1 %v2678_v8 }
  0x8f   :  { %v529_v57 = vpop.permute.xlu1 %528 }
  0x90   :  { %v527_v56 = vpop.permute.xlu0 %526  ;;  %v543_v62 = vsel %vm70_vm1, %v529_v57, 0 }
  0x91   :  { %v532_v59 = vsel %vm530_vm6, %v527_v56, %v529_v57  ;;  %v531_v63 = vsel %vm530_vm6, %v525_v51, %v527_v56  ;;  %v1257_v51 = vsel %vm70_vm1, %v2805_v49, 0 }
  0x92   :  { %2280 = vmatmul.mubr.msk.bf16.vlgmr.msra.gmra.mrb[0].mxu0 %vm66_vm2, %v2908_v13  ;;  %v537_v2 = vsel %vm70_vm1, %v531_v63, 0 }
  0x93   :  { %296 = vmatpush1.bf16.msra.mxu0 %v287_v47  ;;  %327 = vmatprep.mubr.bf16.mxu0 %v2680_v12  ;;  %v652_v0 = vpop.permute.xlu1 %651 }
  0x94   :  { %2287 = vmatprep.subr.msk.bf16.mxu0 %vm70_vm1, %v407_v48  ;;  %v650_v60 = vpop.permute.xlu0 %649 }
  0x95   :  { %v656_v14 = vsel %vm655_vm7, %v650_v60, %v652_v0 }
  0x96   :  { %v662_v17 = vsel %vm70_vm1, %v656_v14, 0 }
  0x97   :  { %v775_v5 = vpop.permute.xlu1 %774 }
  0x98   :  { %2396 = vmatmul.mubr.msk.bf16.vlgmr.msra.gmra.mrb[0].mxu1 %vm66_vm2, %v2926_v52  ;;  %v654_v1 = vpop.permute.xlu0 %653 }
  0x99   :  { %2400 = vmatpush3.bf16.msra.mxu1 %v418_v54  ;;  %2401 = vmatprep.mubr.msk.bf16.mxu1 %vm2679_vm0, %v2678_v8  ;;  %v657_v3 = vsel %vm655_vm7, %v652_v0, %v654_v1  ;;  %v668_v9 = vsel %vm70_vm1, %v654_v1, 0 }
  0x9a   :  { %2405 = vmatprep.subr.bf16.mxu1 %v2678_v8 }
  0x9b   :  { %v779_v16 = vpop.permute.xlu1 %778 }
  0x9c   :  { %v777_v15 = vpop.permute.xlu0 %776  ;;  %v793_v21 = vsel %vm70_vm1, %v779_v16, 0 }
  0x9d   :  { %v782_v18 = vsel %vm780_vm8, %v777_v15, %v779_v16  ;;  %v781_v22 = vsel %vm780_vm8, %v775_v5, %v777_v15 }
  0x9e   :  { %2284 = vmatmul.mubr.msk.bf16.vlgmr.msra.gmra.mrb[0].mxu0 %vm66_vm2, %v2926_v52  ;;  %v787_v25 = vsel %vm70_vm1, %v781_v22, 0 }
  0x9f   :  { %421 = vmatpush1.bf16.msra.mxu0 %v412_v58  ;;  %452 = vmatprep.mubr.bf16.mxu0 %v2680_v12  ;;  %v902_v23 = vpop.permute.xlu1 %901 }
  0xa0   :  { %2291 = vmatprep.subr.msk.bf16.mxu0 %vm70_vm1, %v532_v59  ;;  %v900_v19 = vpop.permute.xlu0 %899 }
  0xa1   :  { %v906_v30 = vsel %vm905_vm9, %v900_v19, %v902_v23 }
  0xa2   :  { %v912_v33 = vsel %vm70_vm1, %v906_v30, 0 }
  0xa3   :  { %v1025_v27 = vpop.permute.xlu1 %1024 }
  0xa4   :  { %2402 = vmatmul.mubr.msk.bf16.vlgmr.msra.gmra.mrb[0].mxu1 %vm66_vm2, %v2944_v61  ;;  %v904_v24 = vpop.permute.xlu0 %903 }
  0xa5   :  { %2406 = vmatpush3.bf16.msra.mxu1 %v543_v62  ;;  %2407 = vmatprep.mubr.msk.bf16.mxu1 %vm2679_vm0, %v2678_v8  ;;  %v907_v26 = vsel %vm905_vm9, %v902_v23, %v904_v24  ;;  %v918_v29 = vsel %vm70_vm1, %v904_v24, 0 }
  0xa6   :  { %2411 = vmatprep.subr.bf16.mxu1 %v2678_v8 }
  0xa7   :  { %v1029_v32 = vpop.permute.xlu1 %1028 }
  0xa8   :  { %v1027_v31 = vpop.permute.xlu0 %1026  ;;  %v1043_v37 = vsel %vm70_vm1, %v1029_v32, 0 }
  0xa9   :  { %v1032_v7 = vsel %vm1030_vm10, %v1027_v31, %v1029_v32  ;;  %v1031_v38 = vsel %vm1030_vm10, %v1025_v27, %v1027_v31 }
  0xaa   :  { %2288 = vmatmul.mubr.msk.bf16.vlgmr.msra.gmra.mrb[0].mxu0 %vm66_vm2, %v2944_v61  ;;  %v1037_v40 = vsel %vm70_vm1, %v1031_v38, 0 }
  0xab   :  { %546 = vmatpush1.bf16.msra.mxu0 %v537_v2  ;;  %577 = vmatprep.mubr.bf16.mxu0 %v2680_v12  ;;  %v1161_v39 = vpop.permute.xlu1 %1160 }
  0xac   :  { %2295 = vmatprep.subr.msk.bf16.mxu0 %vm70_vm1, %v657_v3  ;;  %v1159_v35 = vpop.permute.xlu0 %1158 }
  0xad   :  { %v1164_v11 = vsel %vm63_vm3, %v1159_v35, %v1161_v39 }
  0xae   :  { %v1167_v44 = vsel %vm70_vm1, %v1164_v11, 0 }
  0xaf   :  { %v1365_v45 = vpop.permute.xlu1 %1364 }
  0xb0   :  { %2408 = vmatmul.mubr.msk.bf16.vlgmr.msra.gmra.mrb[0].mxu1 %vm66_vm2, %v2962_v6  ;;  %v1163_v10 = vpop.permute.xlu0 %1162 }
  0xb1   :  { %2412 = vmatpush3.bf16.msra.mxu1 %v668_v9  ;;  %2413 = vmatprep.mubr.msk.bf16.mxu1 %vm2679_vm0, %v2678_v8  ;;  %v1165_v41 = vsel %vm63_vm3, %v1161_v39, %v1163_v10  ;;  %v1173_v43 = vsel %vm70_vm1, %v1163_v10, 0  ;;  %v23_v39 = vsub.s32 0, %v2721_v4  ;;  %v27_v10 = vsub.s32 1, %v2721_v4 }
  0xb2   :  { %2417 = vmatprep.subr.bf16.mxu1 %v2678_v8 }
  0xb3   :  { %v1369_v48 = vpop.permute.xlu1 %1368 }
  0xb4   :  { %v1367_v47 = vpop.permute.xlu0 %1366  ;;  %v1379_v53 = vsel %vm70_vm1, %v1369_v48, 0 }
  0xb5   :  { %v1371_v54 = vsel %vm280_vm4, %v1367_v47, %v1369_v48  ;;  %v1370_v55 = vsel %vm280_vm4, %v1365_v45, %v1367_v47 }
  0xb6   :  { %2292 = vmatmul.mubr.msk.bf16.vlgmr.msra.gmra.mrb[0].mxu0 %vm66_vm2, %v2962_v6 }
  0xb7   :  { %671 = vmatpush1.bf16.msra.mxu0 %v662_v17  ;;  %702 = vmatprep.mubr.bf16.mxu0 %v2680_v12  ;;  %v1486_v49 = vpop.permute.xlu1 %1485 }
  0xb8   :  { %2299 = vmatprep.subr.msk.bf16.mxu0 %vm70_vm1, %v782_v18 }
  0xbb   :  { %v1603_v58 = vpop.permute.xlu1 %1602 }
  0xbc   :  { %2414 = vmatmul.mubr.msk.bf16.vlgmr.msra.gmra.mrb[0].mxu1 %vm66_vm2, %v2980_v20 }
  0xbd   :  { %2418 = vmatpush3.bf16.msra.mxu1 %v793_v21  ;;  %2419 = vmatprep.mubr.msk.bf16.mxu1 %vm2679_vm0, %v2678_v8 }
  0xbe   :  { %2423 = vmatprep.subr.bf16.mxu1 %v2678_v8 }
  0xbf   :  { %v1607_v63 = vpop.permute.xlu1 %1606 }
  0xc0   :  { %v1617_v2 = vsel %vm70_vm1, %v1607_v63, 0 }
  0xc2   :  { %2296 = vmatmul.mubr.msk.bf16.vlgmr.msra.gmra.mrb[0].mxu0 %vm66_vm2, %v2980_v20 }
  0xc3   :  { %796 = vmatpush1.bf16.msra.mxu0 %v787_v25  ;;  %827 = vmatprep.mubr.bf16.mxu0 %v2680_v12  ;;  %v1724_v5 = vpop.permute.xlu1 %1723 }
  0xc4   :  { %2303 = vmatprep.subr.msk.bf16.mxu0 %vm70_vm1, %v907_v26 }
  0xc7   :  { %v1841_v15 = vpop.permute.xlu1 %1840 }
  0xc8   :  { %2420 = vmatmul.mubr.msk.bf16.vlgmr.msra.gmra.mrb[0].mxu1 %vm66_vm2, %v2998_v28 }
  0xc9   :  { %2424 = vmatpush3.bf16.msra.mxu1 %v918_v29  ;;  %2425 = vmatprep.mubr.msk.bf16.mxu1 %vm2679_vm0, %v2678_v8 }
  0xca   :  { %2429 = vmatprep.subr.bf16.mxu1 %v2678_v8 }
  0xcb   :  { %v1845_v19 = vpop.permute.xlu1 %1844 }
  0xcc   :  { %v1855_v23 = vsel %vm70_vm1, %v1845_v19, 0 }
  0xce   :  { %2300 = vmatmul.mubr.msk.bf16.vlgmr.msra.gmra.mrb[0].mxu0 %vm66_vm2, %v2998_v28 }
  0xcf   :  { %921 = vmatpush1.bf16.msra.mxu0 %v912_v33  ;;  %952 = vmatprep.mubr.bf16.mxu0 %v2680_v12  ;;  %v1962_v25 = vpop.permute.xlu1 %1961 }
  0xd0   :  { %2307 = vmatprep.subr.msk.bf16.mxu0 %vm70_vm1, %v1032_v7 }
  0xd3   :  { %v2079_v29 = vpop.permute.xlu1 %2078 }
  0xd4   :  { %2426 = vmatmul.mubr.msk.bf16.vlgmr.msra.gmra.mrb[0].mxu1 %vm66_vm2, %v3016_v36 }
  0xd5   :  { %2430 = vmatpush3.bf16.msra.mxu1 %v1043_v37  ;;  %2431 = vmatprep.mubr.msk.bf16.mxu1 %vm2679_vm0, %v2678_v8 }
  0xd6   :  { %2435 = vmatprep.subr.bf16.mxu1 %v2678_v8 }
  0xd7   :  { %v2083_v33 = vpop.permute.xlu1 %2082 }
  0xd8   :  { %v2093_v35 = vsel %vm70_vm1, %v2083_v33, 0 }
  0xda   :  { %2304 = vmatmul.mubr.msk.bf16.vlgmr.msra.gmra.mrb[0].mxu0 %vm66_vm2, %v3016_v36 }
  0xdb   :  { %1046 = vmatpush1.bf16.msra.mxu0 %v1037_v40  ;;  %1077 = vmatprep.mubr.bf16.mxu0 %v2680_v12 }
  0xdc   :  { %2311 = vmatprep.subr.msk.bf16.mxu0 %vm70_vm1, %v1165_v41 }
  0xe0   :  { %2432 = vmatmul.mubr.msk.bf16.vlgmr.msra.gmra.mrb[0].mxu1 %vm66_vm2, %v3034_v42 }
  0xe1   :  { %2436 = vmatpush3.bf16.msra.mxu1 %v1173_v43  ;;  %2437 = vmatprep.mubr.msk.bf16.mxu1 %vm2679_vm0, %v2678_v8 }
  0xe2   :  { %2441 = vmatprep.subr.bf16.mxu1 %v2678_v8 }
  0xe6   :  { %2308 = vmatmul.mubr.msk.bf16.vlgmr.msra.gmra.mrb[0].mxu0 %vm66_vm2, %v3034_v42 }
  0xe7   :  { %1176 = vmatpush1.bf16.msra.mxu0 %v1167_v44  ;;  %1207 = vmatprep.mubr.bf16.mxu0 %v2680_v12 }
  0xe8   :  { %2314 = vmatprep.subr.msk.bf16.mxu0 %vm70_vm1, %v2811_v50  ;;  %2438 = vmatmul.mubr.msk.bf16.vlgmr.msra.gmra.mrb[4].mxu1 %vm66_vm2, %v2882_v34  ;;  %v1484_v50 = vpop.permute.xlu0 %1483 }
  0xe9   :  { %2442 = vmatpush3.bf16.msra.mxu1 %v1263_v46  ;;  %2443 = vmatprep.mubr.msk.bf16.mxu1 %vm2679_vm0, %v2678_v8  ;;  %v1489_v60 = vsel %vm405_vm5, %v1484_v50, %v1486_v49 }
  0xea   :  { %2447 = vmatprep.subr.bf16.mxu1 %v2678_v8 }
  0xec   :  { %v1488_v56 = vpop.permute.xlu0 %1487 }
  0xed   :  { %v1490_v57 = vsel %vm405_vm5, %v1486_v49, %v1488_v56  ;;  %v1498_v59 = vsel %vm70_vm1, %v1488_v56, 0 }
  0xee   :  { %2312 = vmatmul.mubr.msk.bf16.vlgmr.msra.gmra.mrb[4].mxu0 %vm66_vm2, %v2882_v34  ;;  %v1373_v34 = vsel %vm70_vm1, %v1370_v55, 0 }
  0xef   :  { %1266 = vmatpush1.bf16.msra.mxu0 %v1257_v51  ;;  %1297 = vmatprep.mubr.bf16.mxu0 %v2680_v12 }
  0xf0   :  { %2318 = vmatprep.subr.msk.bf16.mxu0 %vm70_vm1, %v1371_v54  ;;  %v1605_v62 = vpop.permute.xlu0 %1604 }
  0xf1   :  { %v1609_v0 = vsel %vm530_vm6, %v1605_v62, %v1607_v63  ;;  %v1608_v3 = vsel %vm530_vm6, %v1603_v58, %v1605_v62 }
  0xf4   :  { %2444 = vmatmul.mubr.msk.bf16.vlgmr.msra.gmra.mrb[4].mxu1 %vm66_vm2, %v2908_v13  ;;  %v1722_v1 = vpop.permute.xlu0 %1721 }
  0xf5   :  { %2448 = vmatpush3.bf16.msra.mxu1 %v1379_v53  ;;  %2449 = vmatprep.mubr.msk.bf16.mxu1 %vm2679_vm0, %v2678_v8  ;;  %v1727_v17 = vsel %vm655_vm7, %v1722_v1, %v1724_v5 }
  0xf6   :  { %2453 = vmatprep.subr.bf16.mxu1 %v2678_v8 }
  0xf8   :  { %v1726_v9 = vpop.permute.xlu0 %1725 }
  0xf9   :  { %v1728_v14 = vsel %vm655_vm7, %v1724_v5, %v1726_v9  ;;  %v1736_v16 = vsel %vm70_vm1, %v1726_v9, 0 }
  0xfa   :  { %2315 = vmatmul.mubr.msk.bf16.vlgmr.msra.gmra.mrb[4].mxu0 %vm66_vm2, %v2908_v13  ;;  %v1492_v13 = vsel %vm70_vm1, %v1489_v60, 0 }
  0xfb   :  { %1382 = vmatpush1.bf16.msra.mxu0 %v1373_v34  ;;  %1413 = vmatprep.mubr.bf16.mxu0 %v2680_v12 }
  0xfc   :  { %2322 = vmatprep.subr.msk.bf16.mxu0 %vm70_vm1, %v1490_v57  ;;  %v1843_v18 = vpop.permute.xlu0 %1842 }
  0xfd   :  { %v1847_v21 = vsel %vm780_vm8, %v1843_v18, %v1845_v19  ;;  %v1846_v24 = vsel %vm780_vm8, %v1841_v15, %v1843_v18 }
 0x100   :  { %2450 = vmatmul.mubr.msk.bf16.vlgmr.msra.gmra.mrb[4].mxu1 %vm66_vm2, %v2926_v52  ;;  %v1960_v22 = vpop.permute.xlu0 %1959 }
 0x101   :  { %2454 = vmatpush3.bf16.msra.mxu1 %v1498_v59  ;;  %2455 = vmatprep.mubr.msk.bf16.mxu1 %vm2679_vm0, %v2678_v8  ;;  %v1965_v31 = vsel %vm905_vm9, %v1960_v22, %v1962_v25 }
 0x102   :  { %2459 = vmatprep.subr.bf16.mxu1 %v2678_v8 }
 0x104   :  { %v1964_v26 = vpop.permute.xlu0 %1963 }
 0x105   :  { %v1966_v27 = vsel %vm905_vm9, %v1962_v25, %v1964_v26  ;;  %v1974_v30 = vsel %vm70_vm1, %v1964_v26, 0 }
 0x106   :  { %2319 = vmatmul.mubr.msk.bf16.vlgmr.msra.gmra.mrb[4].mxu0 %vm66_vm2, %v2926_v52  ;;  %v1611_v52 = vsel %vm70_vm1, %v1608_v3, 0 }
 0x107   :  { %1501 = vmatpush1.bf16.msra.mxu0 %v1492_v13  ;;  %1532 = vmatprep.mubr.bf16.mxu0 %v2680_v12 }
 0x108   :  { %2326 = vmatprep.subr.msk.bf16.mxu0 %vm70_vm1, %v1609_v0  ;;  %v2081_v32 = vpop.permute.xlu0 %2080 }
 0x109   :  { %v2085_v7 = vsel %vm1030_vm10, %v2081_v32, %v2083_v33  ;;  %v2084_v37 = vsel %vm1030_vm10, %v2079_v29, %v2081_v32 }
 0x10a   :  { %v2087_v38 = vsel %vm70_vm1, %v2084_v37, 0 }
 0x10c   :  { %2456 = vmatmul.mubr.msk.bf16.vlgmr.msra.gmra.mrb[4].mxu1 %vm66_vm2, %v2944_v61 }
 0x10d   :  { %2460 = vmatpush3.bf16.msra.mxu1 %v1617_v2  ;;  %2461 = vmatprep.mubr.msk.bf16.mxu1 %vm2679_vm0, %v2678_v8 }
 0x10e   :  { %2465 = vmatprep.subr.bf16.mxu1 %v2678_v8 }
 0x112   :  { %2323 = vmatmul.mubr.msk.bf16.vlgmr.msra.gmra.mrb[4].mxu0 %vm66_vm2, %v2944_v61  ;;  %v1730_v61 = vsel %vm70_vm1, %v1727_v17, 0 }
 0x113   :  { %1620 = vmatpush1.bf16.msra.mxu0 %v1611_v52  ;;  %1651 = vmatprep.mubr.bf16.mxu0 %v2680_v12 }
 0x114   :  { %2330 = vmatprep.subr.msk.bf16.mxu0 %vm70_vm1, %v1728_v14 }
 0x118   :  { %2462 = vmatmul.mubr.msk.bf16.vlgmr.msra.gmra.mrb[4].mxu1 %vm66_vm2, %v2962_v6 }
 0x119   :  { %2466 = vmatpush3.bf16.msra.mxu1 %v1736_v16  ;;  %2467 = vmatprep.mubr.msk.bf16.mxu1 %vm2679_vm0, %v2678_v8 }
 0x11a   :  { %2471 = vmatprep.subr.bf16.mxu1 %v2678_v8 }
 0x11e   :  { %2327 = vmatmul.mubr.msk.bf16.vlgmr.msra.gmra.mrb[4].mxu0 %vm66_vm2, %v2962_v6  ;;  %v1849_v6 = vsel %vm70_vm1, %v1846_v24, 0 }
 0x11f   :  { %1739 = vmatpush1.bf16.msra.mxu0 %v1730_v61  ;;  %1770 = vmatprep.mubr.bf16.mxu0 %v2680_v12 }
 0x120   :  { %2334 = vmatprep.subr.msk.bf16.mxu0 %vm70_vm1, %v1847_v21 }
 0x124   :  { %2468 = vmatmul.mubr.msk.bf16.vlgmr.msra.gmra.mrb[4].mxu1 %vm66_vm2, %v2980_v20 }
 0x125   :  { %2472 = vmatpush3.bf16.msra.mxu1 %v1855_v23  ;;  %2473 = vmatprep.mubr.msk.bf16.mxu1 %vm2679_vm0, %v2678_v8 }
 0x126   :  { %2477 = vmatprep.subr.bf16.mxu1 %v2678_v8 }
 0x12a   :  { %2331 = vmatmul.mubr.msk.bf16.vlgmr.msra.gmra.mrb[4].mxu0 %vm66_vm2, %v2980_v20  ;;  %v1968_v20 = vsel %vm70_vm1, %v1965_v31, 0 }
 0x12b   :  { %1858 = vmatpush1.bf16.msra.mxu0 %v1849_v6  ;;  %1889 = vmatprep.mubr.bf16.mxu0 %v2680_v12 }
 0x12c   :  { %2338 = vmatprep.subr.msk.bf16.mxu0 %vm70_vm1, %v1966_v27 }
 0x130   :  { %2474 = vmatmul.mubr.msk.bf16.vlgmr.msra.gmra.mrb[4].mxu1 %vm66_vm2, %v2998_v28 }
 0x131   :  { %2478 = vmatpush3.bf16.msra.mxu1 %v1974_v30  ;;  %2479 = vmatprep.mubr.msk.bf16.mxu1 %vm2679_vm0, %v2678_v8 }
 0x132   :  { %2483 = vmatprep.subr.bf16.mxu1 %v2678_v8 }
 0x136   :  { %2335 = vmatmul.mubr.msk.bf16.vlgmr.msra.gmra.mrb[4].mxu0 %vm66_vm2, %v2998_v28  ;;  %v31_v28 = vsub.s32 2, %v2721_v4 }
 0x137   :  { %1977 = vmatpush1.bf16.msra.mxu0 %v1968_v20  ;;  %2008 = vmatprep.mubr.bf16.mxu0 %v2680_v12 }
 0x138   :  { %2342 = vmatprep.subr.msk.bf16.mxu0 %vm70_vm1, %v2085_v7 }
 0x13c   :  { %2480 = vmatmul.mubr.msk.bf16.vlgmr.msra.gmra.mrb[4].mxu1 %vm66_vm2, %v3016_v36 }
 0x13d   :  { %2484 = vmatpush3.bf16.msra.mxu1 %v2093_v35  ;;  %2485 = vmatprep.mubr.msk.bf16.mxu1 %vm2679_vm0, %v2678_v8  ;;  %v19_v8 = vld [vmem:[%s3185_s3] sm:$0x7] }
 0x13e   :  { %v32_v41 = vrot.slane %v19_v8, %v31_v28  ;;  %v24_v43 = vrot.slane %v19_v8, %v23_v39  ;;  %v28_v44 = vrot.slane %v19_v8, %v27_v10  ;;  %v2689_v28 = vmov 1  }
 0x13f   :  { %2634 = vset.pattern.permute.xlu0 %v2689_v28 }
 0x142   :  { %2339 = vmatmul.mubr.msk.bf16.vlgmr.msra.gmra.mrb[4].mxu0 %vm66_vm2, %v3016_v36 }
 0x143   :  { %2096 = vmatpush1.bf16.msra.mxu0 %v2087_v38  ;;  %2127 = vmatprep.mubr.bf16.mxu0 %v2680_v12  ;;  %v2220_v38 = vld [vmem:[%s3184_s2] sm:$0xff]  ;;  %s2690_s2 = smov [#allocation2]  }
 0x144   :  { %s2264_s23 = sshll.u32 %s2690_s2, 4  ;;  %s2265_s23 = int_to_ptr.vmem [resolvable:$true] %s2264_s23 }
 0x145   :  { %s2653_s22 = scalar_lea.vmem %s2265_s23, 768  ;;  %p2658_p1 = scmp.lt.s32.totalorder %s2265_s23, %s2265_s23 }
 0x146   :  { %p2654_p0 = scmp.ne.s32.totalorder %s2265_s23, %s2653_s22  ;;  %p2659_p2 = scmp.lt.s32.totalorder %s2653_s22, %s2653_s22 }
 0x148   :  { %2486 = vmatmul.mubr.msk.bf16.vlgmr.msra.gmra.mrb[4].mxu1 %vm66_vm2, %v3034_v42  ;;  %p2660_p3 = por %p2659_p2, %p2658_p1 }
 0x14a   :  { %p2661_p4 = pnand %p2660_p3, %p2654_p0 }
 0x14e   :  { %2343 = vmatmul.mubr.msk.bf16.vlgmr.msra.gmra.mrb[4].mxu0 %vm66_vm2, %v3034_v42 }
 0x1b3   :  { %v1120_v36 = vpop.f32.mrb[0].mxu1 }
 0x1b4   :  { %v2433_v40 = vpop.f32.mrb[1].mxu1  ;;  %v1131_v46 = vmul.f32 %v1120_v36, %v32_v41 }
 0x1b5   :  { %v1123_v12 = vpop.f32.mrb[2].mxu1 }
 0x1b6   :  { %v2434_v11 = vpop.f32.mrb[3].mxu1  ;;  %v1134_v53 = vsel %vm1133_vm11, %v1131_v46, 0.0 }
 0x1b9   :  { %v1079_v45 = vpop.f32.mrb[0].mxu0 }
 0x1ba   :  { %v1129_v42 = vmul.f32 %v1079_v45, %v24_v43  ;;  %v1081_v47 = vpop.f32.mrb[1].mxu0 }
 0x1bb   :  { %v1130_v48 = vmul.f32 %v1081_v47, %v28_v44  ;;  %v1083_v51 = vpop.f32.mrb[2].mxu0 }
 0x1bc   :  { %v1084_v54 = vpop.f32.mrb[3].mxu0 }
 0x1bd   :  { %v1132_v50 = vadd.f32 %v1130_v48, %v1129_v42 }
 0x1bf   :  { %v1135_v55 = vadd.f32 %v1134_v53, %v1132_v50 }
 0x1c1   :  { %1136 = vadd.xlane.f32.xlu0 %v1135_v55 }
 0x21b   :  { %v2170_v4 = vpop.f32.mrb[4].mxu1 }
 0x21c   :  { %v2487_v49 = vpop.f32.mrb[5].mxu1  ;;  %v2181_v58 = vmul.f32 %v2170_v4, %v32_v41 }
 0x21d   :  { %v2173_v56 = vpop.f32.mrb[6].mxu1 }
 0x21e   :  { %v2488_v34 = vpop.f32.mrb[7].mxu1  ;;  %v2183_v1 = vsel %vm1133_vm11, %v2181_v58, 0.0 }
 0x221   :  { %v2129_v57 = vpop.f32.mrb[4].mxu0 }
 0x222   :  { %v2179_v59 = vmul.f32 %v2129_v57, %v24_v43  ;;  %v2131_v60 = vpop.f32.mrb[5].mxu0 }
 0x223   :  { %v2180_v62 = vmul.f32 %v2131_v60, %v28_v44  ;;  %v2133_v63 = vpop.f32.mrb[6].mxu0 }
 0x224   :  { %v2134_v13 = vpop.f32.mrb[7].mxu0 }
 0x225   :  { %v2182_v0 = vadd.f32 %v2180_v62, %v2179_v59 }
 0x227   :  { %v2184_v2 = vadd.f32 %v2183_v1, %v2182_v0 }
 0x229   :  { %2185 = vadd.xlane.f32.xlu1 %v2184_v2 }
 0x24e   :  { %v1137_v3 = vpop.xlane.xlu0 %1136 }
 0x2b6   :  { %v2186_v5 = vpop.xlane.xlu1 %2185 }
 0x2b7   :  { %v2187_v9 = vadd.f32 %v2186_v5, %v1137_v3 }
 0x2b9   :  { %v2188_v52 = vmul.f32 0.001953125, %v2187_v9 }
 0x2bb   :  { %v2189_v14 = vsub.f32 %v1079_v45, %v2188_v52  ;;  %v2190_v15 = vsub.f32 %v1081_v47, %v2188_v52  ;;  %v2191_v16 = vsub.f32 %v1120_v36, %v2188_v52  ;;  %v2204_v17 = vsub.f32 %v2129_v57, %v2188_v52 }
 0x2bc   :  { %v2205_v18 = vsub.f32 %v2131_v60, %v2188_v52  ;;  %v2206_v19 = vsub.f32 %v2170_v4, %v2188_v52 }
 0x2bd   :  { %v2192_v61 = vmul.f32 %v2189_v14, %v2189_v14  ;;  %v2193_v21 = vmul.f32 %v2190_v15, %v2190_v15  ;;  %v2194_v22 = vmul.f32 %v2191_v16, %v2191_v16  ;;  %v2207_v23 = vmul.f32 %v2204_v17, %v2204_v17 }
 0x2be   :  { %v2208_v24 = vmul.f32 %v2205_v18, %v2205_v18  ;;  %v2209_v25 = vmul.f32 %v2206_v19, %v2206_v19 }
 0x2bf   :  { %v2195_v26 = vmul.f32 %v2192_v61, %v24_v43  ;;  %v2196_v6 = vmul.f32 %v2193_v21, %v28_v44  ;;  %v2197_v27 = vmul.f32 %v2194_v22, %v32_v41  ;;  %v2210_v29 = vmul.f32 %v2207_v23, %v24_v43 }
 0x2c0   :  { %v2211_v30 = vmul.f32 %v2208_v24, %v28_v44  ;;  %v2212_v31 = vmul.f32 %v2209_v25, %v32_v41 }
 0x2c1   :  { %v2198_v32 = vadd.f32 %v2196_v6, %v2195_v26  ;;  %v2199_v33 = vsel %vm1133_vm11, %v2197_v27, 0.0 }
 0x2c2   :  { %v2213_v7 = vadd.f32 %v2211_v30, %v2210_v29  ;;  %v2214_v35 = vsel %vm1133_vm11, %v2212_v31, 0.0 }
 0x2c3   :  { %v2200_v20 = vadd.f32 %v2199_v33, %v2198_v32 }
 0x2c4   :  { %v2215_v37 = vadd.f32 %v2214_v35, %v2213_v7 }
 0x2c5   :  { %2201 = vadd.xlane.f32.xlu0 %v2200_v20 }
 0x2c9   :  { %2216 = vadd.xlane.f32.xlu0 %v2215_v37 }
 0x2df   :  { %2234 = vperm.xlu0 %2634, %v2220_v38  }
 0x352   :  { %v2202_v39 = vpop.xlane.xlu0 %2201 }
 0x356   :  { %v2217_v8 = vpop.xlane.xlu0 %2216 }
 0x357   :  { %v2218_v10 = vadd.f32 %v2217_v8, %v2202_v39 }
 0x359   :  { %v2219_v36 = vmul.f32 0.001953125, %v2218_v10 }
 0x35b   :  { %v2221_v40 = vadd.f32 1e-05, %v2219_v36 }
 0x35d   :  { %2651 = vrsqrt.f32 %v2221_v40 }
 0x35e   :  { %v2235_v11 = vpop.permute.xlu0 %2234 }
 0x367   :  { %v2652_v41 = vpop.eup %2651 }
 0x368   :  { %v2223_v12 = vmul.f32 %v2652_v41, %v2220_v38 }
 0x36a   :  { %2226 = vperm.xlu1 %2633, %v2223_v12  }
 0x3e9   :  { %v2227_v43 = vpop.permute.xlu1 %2226 }
 0x3ea   :  { %v2229_v44 = vmul.f32 %v2227_v43, %v2189_v14  ;;  %v2230_v45 = vmul.f32 %v2227_v43, %v2190_v15  ;;  %v2231_v46 = vmul.f32 %v2227_v43, %v2191_v16  ;;  %v2246_v42 = vmul.f32 %v2227_v43, %v2204_v17 }
 0x3eb   :  { %v2247_v47 = vmul.f32 %v2227_v43, %v2205_v18  ;;  %v2248_v48 = vmul.f32 %v2227_v43, %v2206_v19 }
 0x3ec   :  { %v2237_v51 = vadd.f32 %v2235_v11, %v2229_v44  ;;  %v2238_v54 = vadd.f32 %v2235_v11, %v2230_v45  ;;  %v2239_v50 = vadd.f32 %v2235_v11, %v2231_v46  ;;  %v2249_v53 = vadd.f32 %v2246_v42, %v2235_v11 }
 0x3ed   :  { %v2250_v55 = vadd.f32 %v2247_v47, %v2235_v11  ;;  %v2251_v4 = vadd.f32 %v2248_v48, %v2235_v11 }
 0x3ee   :  { %v2240_v49 = vmax.f32 %v2237_v51, 0.0  ;;  %v2241_v56 = vmax.f32 %v2238_v54, 0.0  ;;  %v2242_v34 = vmax.f32 %v2239_v50, 0.0  ;;  %v2252_v57 = vmax.f32 %v2249_v53, 0.0 }
 0x3ef   :  { %v2253_v58 = vmax.f32 %v2250_v55, 0.0  ;;  %v2254_v59 = vmax.f32 %v2251_v4, 0.0 }
 0x3f0   :  { %2243 = vst [vmem:[#allocation2] sm:$0xff] %v2240_v49  ;;  %2244 = vst [vmem:[#allocation2 + $0x8] sm:$0xff] %v2241_v56 }
 0x3f1   :  { %2245 = vst.msk [vmem:[#allocation2 + $0x10] sm:$0xff] %vm1133_vm11, %v2242_v34  ;;  %2256 = vst [vmem:[#allocation2 + $0x18] sm:$0xff] %v2252_v57 }
 0x3f2   :  { %2257 = vst [vmem:[#allocation2 + $0x20] sm:$0xff] %v2253_v58  ;;  %2258 = vst.msk [vmem:[#allocation2 + $0x28] sm:$0xff] %vm1133_vm11, %v2254_v59 }
 0x3f3   :  { %2664 = shalt.err (!%p2661_p4)
}
 0x3f4   :  { %s2665_s26 = scalar_lea.hbm %s3186_s4, 768 }
 0x3f5   :  { %p2666_p5 = scmp.ne.s32.totalorder %s3186_s4, %s2665_s26  ;;  %p2669_p6 = scmp.lt.u32.totalorder %s2665_s26, %s3186_s4 }
 0x3f7   :  { %p2671_p7 = pnand %p2669_p6, %p2666_p5 }
 0x3f9   :  { %2674 = shalt.err (!%p2671_p7)
}
 0x3fa   :  { %s2691_s30 = smov 384   ;;  %s2692_s5 = smov 24  }
 0x3fb   :  { %2270 = dma.vmem_to_hbm [thread:$0]  %s2265_s23, 768, %s3186_s4, [#allocation3], %s2691_s30, %s2691_s30, %s2692_s5  }
 0x3fc   :  { %2675 = dma.done.wait [#allocation3], 768  }
 0x3fd   :  { %2676 = vsyncadd [#allocation3], 4294966528 }
 0x3fe   :  { %2274 = vsyncpa [#allocation3], 1 }

</bundles_post_ra>
